<compile_context>
chip_gen: v5e
topology: v5e:2x2
jax: 0.10.0
libtpu: 0.0.40
codegen_flags: <defaults>
</compile_context>

<pallas_src>
import math

import jax
import jax.numpy as jnp
from jax.experimental import pallas as pl
from jax.experimental.pallas import tpu as pltpu


def make_kernel(num_layer, T, I, H, TILE_B):
    """Kernel for a fixed layer count / timestep count / batch tile."""

    def kernel(*refs):
        len_ref = refs[0]              # (1, TILE_B, 1) int32  sequence lengths (0 for padded rows)
        feat_ref = refs[1]             # (1, T*TILE_B, I) f32  time-major features for this tile
        w_ih0_ref = refs[2]            # (I, H)   layer-0 input weights (transposed)
        w_hh0_ref = refs[3]            # (H, H)   layer-0 recurrent weights (transposed)
        b0_ref = refs[4]               # (1, H)   layer-0 summed bias (b_ih + b_hh)
        idx = 5
        wcat_refs, bias_refs = [], []
        for _ in range(num_layer - 1):
            wcat_refs.append(refs[idx])       # (2H, H)  stacked [w_ih.T ; w_hh.T]
            bias_refs.append(refs[idx + 1])   # (1, H)   summed bias
            idx += 2
        w_out_ref = refs[idx]          # (H, Cp)
        b_out_ref = refs[idx + 1]      # (1, Cp)
        out_ref = refs[idx + 2]        # (TILE_B, Cp)

        # ---- Hoist every loop-invariant load / broadcast (JAX does not CSE broadcasts).
        lens = len_ref[0]                                   # (TILE_B, 1) int32
        w_hh0 = w_hh0_ref[...]                              # (H, H)
        wcats = [r[...] for r in wcat_refs]                 # each (2H, H)
        biases = [jnp.broadcast_to(r[...], (TILE_B, H)) for r in bias_refs]

        # ---- Layer-0 input projection for ALL timesteps: one MXU matmul, kept in vregs
        # (no VMEM scratch round-trip).  Rows t*TILE_B .. t*TILE_B+TILE_B-1 belong to step t.
        x0 = (
            jnp.dot(feat_ref[0], w_ih0_ref[...], preferred_element_type=jnp.float32)
            + b0_ref[...]
        )                                                    # (T*TILE_B, H)

        hs = [jnp.zeros((TILE_B, H), jnp.float32) for _ in range(num_layer)]
        acc = jnp.zeros((TILE_B, H), jnp.float32)

        # T is a small compile-time constant -> fully unrolled Python loop; `t` is concrete,
        # so x0 slices are static and sublane-aligned.
        for t in range(T):
            valid = jnp.broadcast_to(t < lens, (TILE_B, H))  # one broadcast/step, reused below

            # Layer 0: input projection was hoisted; only the recurrent matmul remains.
            # TODO(synk): pltpu.matmul_push_rhs could hold w_hh0/wcats in MXU staging regs
            # across the T loop; left out pending bundle-dump verification.
            h_new = jnp.tanh(
                x0[t * TILE_B:(t + 1) * TILE_B, :]
                + jnp.dot(hs[0], w_hh0, preferred_element_type=jnp.float32)
            )
            hs[0] = jnp.where(valid, h_new, hs[0])           # freeze past seq end
            x = hs[0]

            # Layers 1..L-1: fused [x, h] @ [w_ih ; w_hh] -> one MXU op per layer-step.
            for l in range(1, num_layer):
                xh = jnp.concatenate([x, hs[l]], axis=1)     # (TILE_B, 2H)
                h_new = jnp.tanh(
                    jnp.dot(xh, wcats[l - 1], preferred_element_type=jnp.float32)
                    + biases[l - 1]
                )
                hs[l] = jnp.where(valid, h_new, hs[l])
                x = hs[l]

            # pad_packed_sequence: zeros at padded steps.
            acc = acc + jnp.where(valid, x, 0.0)

        # Per-row valid-step count == the PyTorch elementwise nonzero count unless a tanh
        # output is exactly 0.0 (measure-zero).  clip>=1: zero-length rows give 0, not NaN.
        cnt = jnp.clip(lens, 1, T).astype(jnp.float32)       # (TILE_B, 1)
        avg = acc / cnt
        out_ref[...] = (
            jnp.dot(avg, w_out_ref[...], preferred_element_type=jnp.float32)
            + b_out_ref[...]
        )

    return kernel


def freq_classifier_forward(feature, input_len, params):
    """feature: (B, T, I) f32 batch-first (PyTorch convention); input_len: (B,) ints."""
    B, T, I = feature.shape
    num_layer = len(params["w_ih"])
    H = params["w_hh"][0].shape[0]
    C = params["w_out"].shape[0]

    # Batch tiling: one grid step per batch tile ("parallel" -> sharded across TCs on v7x).
    Bp = ((B + 7) // 8) * 8                  # sublane-pad the batch
    if Bp > 128:
        TILE_B = 128
        Bp = ((Bp + 127) // 128) * 128
    else:
        TILE_B = Bp
    nb = Bp // TILE_B
    Cp = ((C + 127) // 128) * 128            # lane-dense output

    # Features -> per-tile contiguous, time-major slabs: (nb, T*TILE_B, I); padded rows = 0.
    feat = jnp.pad(feature.astype(jnp.float32), ((0, Bp - B), (0, 0), (0, 0)))   # (Bp, T, I)
    feat = (feat.reshape(nb, TILE_B, T, I)
                .transpose(0, 2, 1, 3)
                .reshape(nb, T * TILE_B, I))

    lens = jnp.zeros((Bp,), jnp.int32).at[:B].set(jnp.asarray(input_len, jnp.int32))
    lens = lens.reshape(nb, TILE_B, 1)

    # Layer 0: separate (transposed) input / recurrent weights + pre-summed bias.
    w_ih0_t = params["w_ih"][0].T.astype(jnp.float32)                     # (I, H)
    w_hh0_t = params["w_hh"][0].T.astype(jnp.float32)                     # (H, H)
    b0 = (params["b_ih"][0] + params["b_hh"][0]).reshape(1, H).astype(jnp.float32)

    ins = [lens, feat, w_ih0_t, w_hh0_t, b0]
    in_specs = [
        pl.BlockSpec((1, TILE_B, 1), lambda b: (b, 0, 0)),
        pl.BlockSpec((1, T * TILE_B, I), lambda b: (b, 0, 0)),
        pl.BlockSpec((I, H), lambda b: (0, 0)),
        pl.BlockSpec((H, H), lambda b: (0, 0)),
        pl.BlockSpec((1, H), lambda b: (0, 0)),
    ]

    # Layers 1..L-1: stacked [w_ih.T ; w_hh.T] and pre-summed bias.
    for l in range(1, num_layer):
        w_cat = jnp.concatenate(
            [params["w_ih"][l].T, params["w_hh"][l].T], axis=0
        ).astype(jnp.float32)                                             # (2H, H)
        b_l = (params["b_ih"][l] + params["b_hh"][l]).reshape(1, H).astype(jnp.float32)
        ins += [w_cat, b_l]
        in_specs += [
            pl.BlockSpec((2 * H, H), lambda b: (0, 0)),
            pl.BlockSpec((1, H), lambda b: (0, 0)),
        ]

    # Output projection, lane-padded to Cp (zero columns -> zero padded outputs).
    w_out_p = jnp.zeros((H, Cp), jnp.float32).at[:, :C].set(
        params["w_out"].T.astype(jnp.float32)
    )
    b_out_p = jnp.zeros((1, Cp), jnp.float32).at[0, :C].set(
        params["b_out"].astype(jnp.float32)
    )
    ins += [w_out_p, b_out_p]
    in_specs += [
        pl.BlockSpec((H, Cp), lambda b: (0, 0)),
        pl.BlockSpec((1, Cp), lambda b: (0, 0)),
    ]

    kernel = make_kernel(num_layer, T, I, H, TILE_B)
    out = pl.pallas_call(
        kernel,
        out_shape=jax.ShapeDtypeStruct((Bp, Cp), jnp.float32),
        grid=(nb,),
        in_specs=in_specs,
        out_specs=pl.BlockSpec((TILE_B, Cp), lambda b: (b, 0)),
        compiler_params=pltpu.CompilerParams(dimension_semantics=("parallel",)),
    )(*ins)
    return out[:B, :C]


def init_params(key, input_size, hidden_dim, num_class, num_layer):
    """Deterministic init matching nn.RNN / nn.Linear shapes (uniform(-1/sqrt(H), 1/sqrt(H)))."""
    k = 1.0 / math.sqrt(hidden_dim)
    keys = jax.random.split(key, 4 * num_layer + 2)
    w_ih, w_hh, b_ih, b_hh = [], [], [], []
    for l in range(num_layer):
        in_l = input_size if l == 0 else hidden_dim
        w_ih.append(jax.random.uniform(keys[4 * l + 0], (hidden_dim, in_l), jnp.float32, -k, k))
        w_hh.append(jax.random.uniform(keys[4 * l + 1], (hidden_dim, hidden_dim), jnp.float32, -k, k))
        b_ih.append(jax.random.uniform(keys[4 * l + 2], (hidden_dim,), jnp.float32, -k, k))
        b_hh.append(jax.random.uniform(keys[4 * l + 3], (hidden_dim,), jnp.float32, -k, k))
    w_out = jax.random.uniform(keys[-2], (num_class, hidden_dim), jnp.float32, -k, k)
    b_out = jax.random.uniform(keys[-1], (num_class,), jnp.float32, -k, k)
    return dict(w_ih=w_ih, w_hh=w_hh, b_ih=b_ih, b_hh=b_hh, w_out=w_out, b_out=b_out)


def reference_forward(feature, input_len, params):
    """Pure-JAX reference of the packed-RNN + masked-mean + linear forward."""
    B, T, _ = feature.shape
    num_layer = len(params["w_ih"])
    H = params["w_hh"][0].shape[0]
    lens = jnp.asarray(input_len, jnp.int32)
    h = [jnp.zeros((B, H), jnp.float32) for _ in range(num_layer)]
    outs = []
    for t in range(T):
        valid = (t < lens).astype(jnp.float32)[:, None]
        x = feature[:, t, :]
        for l in range(num_layer):
            hn = jnp.tanh(x @ params["w_ih"][l].T + params["b_ih"][l]
                          + h[l] @ params["w_hh"][l].T + params["b_hh"][l])
            h[l] = valid * hn + (1.0 - valid) * h[l]
            x = h[l]
        outs.append(valid * x)
    out = jnp.stack(outs, axis=1)                       # (B, T, H)
    mask = (out != 0.0).astype(jnp.float32)
    avg = (out * mask).sum(axis=1) / mask.sum(axis=1)
    return avg @ params["w_out"].T + params["b_out"]


if __name__ == "__main__":
    # Small shapes consistent with the module's forward.
    B, T = 2, 8
    input_size, hidden_dim, num_class, num_layer = 16, 32, 4, 2

    key = jax.random.PRNGKey(0)
    k_feat, k_param = jax.random.split(key)

    feature = jax.random.normal(k_feat, (B, T, input_size), jnp.float32)  # batch-first, like PyTorch
    input_len = jnp.array([8, 5], jnp.int32)  # sorted descending (pack_padded_sequence default)

    params = init_params(k_param, input_size, hidden_dim, num_class, num_layer)

    out = freq_classifier_forward(feature, input_len, params)
    out = jax.block_until_ready(out)

    ref = reference_forward(feature, input_len, params)
    assert out.shape == (B, num_class)
    assert jnp.allclose(out, ref, rtol=1e-4, atol=1e-4), (out, ref)

    print("KERNEL_OK")
</pallas_src>

<mosaic_0001>
module attributes {stable_mosaic.version = 11 : i64} {
  func.func @kernel(%arg0: i32, %arg1: memref<1x8x1xi32, #tpu.memory_space<vmem>>, %arg2: memref<1x64x16xf32, #tpu.memory_space<vmem>>, %arg3: memref<16x32xf32, #tpu.memory_space<vmem>>, %arg4: memref<32x32xf32, #tpu.memory_space<vmem>>, %arg5: memref<1x32xf32, #tpu.memory_space<vmem>>, %arg6: memref<64x32xf32, #tpu.memory_space<vmem>>, %arg7: memref<1x32xf32, #tpu.memory_space<vmem>>, %arg8: memref<32x128xf32, #tpu.memory_space<vmem>>, %arg9: memref<1x128xf32, #tpu.memory_space<vmem>>, %arg10: memref<8x128xf32, #tpu.memory_space<vmem>>) attributes {dimension_semantics = [#tpu.dimension_semantics<parallel>], iteration_bounds = array<i64: 1>, scalar_prefetch = 0 : i64, scratch_operands = 0 : i64, tpu.core_type = #tpu.core_type<tc>, window_params = [{transform_indices = @transform_0, window_bounds = array<i64: 1, 8, 1>}, {transform_indices = @transform_1, window_bounds = array<i64: 1, 64, 16>}, {pipeline_mode = #tpu.pipeline_mode<synchronous>, transform_indices = @transform_2, window_bounds = array<i64: 16, 32>}, {pipeline_mode = #tpu.pipeline_mode<synchronous>, transform_indices = @transform_3, window_bounds = array<i64: 32, 32>}, {pipeline_mode = #tpu.pipeline_mode<synchronous>, transform_indices = @transform_4, window_bounds = array<i64: 1, 32>}, {pipeline_mode = #tpu.pipeline_mode<synchronous>, transform_indices = @transform_5, window_bounds = array<i64: 64, 32>}, {pipeline_mode = #tpu.pipeline_mode<synchronous>, transform_indices = @transform_6, window_bounds = array<i64: 1, 32>}, {pipeline_mode = #tpu.pipeline_mode<synchronous>, transform_indices = @transform_7, window_bounds = array<i64: 32, 128>}, {pipeline_mode = #tpu.pipeline_mode<synchronous>, transform_indices = @transform_8, window_bounds = array<i64: 1, 128>}, {transform_indices = @transform_9, window_bounds = array<i64: 8, 128>}]} {
    %c0 = arith.constant 0 : index
    %c0_0 = arith.constant 0 : index
    %c0_1 = arith.constant 0 : index
    %0 = vector.load %arg1[%c0, %c0_0, %c0_1] : memref<1x8x1xi32, #tpu.memory_space<vmem>>, vector<1x8x1xi32>
    %1 = vector.shape_cast %0 : vector<1x8x1xi32> to vector<8x1xi32>
    %c0_2 = arith.constant 0 : index
    %c0_3 = arith.constant 0 : index
    %2 = vector.load %arg4[%c0_2, %c0_3] : memref<32x32xf32, #tpu.memory_space<vmem>>, vector<32x32xf32>
    %c0_4 = arith.constant 0 : index
    %c0_5 = arith.constant 0 : index
    %3 = vector.load %arg6[%c0_4, %c0_5] : memref<64x32xf32, #tpu.memory_space<vmem>>, vector<64x32xf32>
    %c0_6 = arith.constant 0 : index
    %c0_7 = arith.constant 0 : index
    %4 = vector.load %arg7[%c0_6, %c0_7] : memref<1x32xf32, #tpu.memory_space<vmem>>, vector<1x32xf32>
    %5 = vector.shape_cast %4 : vector<1x32xf32> to vector<1x32xf32>
    %6 = vector.broadcast %5 : vector<1x32xf32> to vector<8x32xf32>
    %c0_8 = arith.constant 0 : index
    %c0_9 = arith.constant 0 : index
    %c0_10 = arith.constant 0 : index
    %7 = vector.load %arg2[%c0_8, %c0_9, %c0_10] : memref<1x64x16xf32, #tpu.memory_space<vmem>>, vector<1x64x16xf32>
    %8 = vector.shape_cast %7 : vector<1x64x16xf32> to vector<64x16xf32>
    %c0_11 = arith.constant 0 : index
    %c0_12 = arith.constant 0 : index
    %9 = vector.load %arg3[%c0_11, %c0_12] : memref<16x32xf32, #tpu.memory_space<vmem>>, vector<16x32xf32>
    %cst = arith.constant dense<0.000000e+00> : vector<64x32xf32>
    %10 = tpu.matmul %8, %9, %cst {dimension_numbers = #tpu.dot_dimension_numbers<[1], [0], [0], [1], [0, 0, 1, 1], [], []>} : vector<64x16xf32>, vector<16x32xf32>, vector<64x32xf32> -> vector<64x32xf32>
    %c0_13 = arith.constant 0 : index
    %c0_14 = arith.constant 0 : index
    %11 = vector.load %arg5[%c0_13, %c0_14] : memref<1x32xf32, #tpu.memory_space<vmem>>, vector<1x32xf32>
    %12 = vector.broadcast %11 : vector<1x32xf32> to vector<64x32xf32>
    %13 = arith.addf %10, %12 : vector<64x32xf32>
    %cst_15 = arith.constant 0.000000e+00 : f32
    %14 = vector.broadcast %cst_15 : f32 to vector<8x32xf32>
    %cst_16 = arith.constant 0.000000e+00 : f32
    %15 = vector.broadcast %cst_16 : f32 to vector<8x32xf32>
    %cst_17 = arith.constant 0.000000e+00 : f32
    %16 = vector.broadcast %cst_17 : f32 to vector<8x32xf32>
    %c0_i32 = arith.constant 0 : i32
    %17 = vector.broadcast %c0_i32 : i32 to vector<8x1xi32>
    %18 = arith.cmpi sgt, %1, %17 : vector<8x1xi32>
    %19 = vector.shape_cast %18 : vector<8x1xi1> to vector<8x1xi1>
    %20 = vector.broadcast %19 : vector<8x1xi1> to vector<8x32xi1>
    %21 = vector.extract_strided_slice %13 {offsets = [0, 0], sizes = [8, 32], strides = [1, 1]} : vector<64x32xf32> to vector<8x32xf32>
    %cst_18 = arith.constant dense<0.000000e+00> : vector<8x32xf32>
    %22 = tpu.matmul %14, %2, %cst_18 {dimension_numbers = #tpu.dot_dimension_numbers<[1], [0], [0], [1], [0, 0, 1, 1], [], []>} : vector<8x32xf32>, vector<32x32xf32>, vector<8x32xf32> -> vector<8x32xf32>
    %23 = arith.addf %21, %22 : vector<8x32xf32>
    %24 = math.tanh %23 : vector<8x32xf32>
    %25 = arith.select %20, %24, %14 : vector<8x32xi1>, vector<8x32xf32>
    %26 = tpu.concatenate %25, %15 in 1 : vector<8x32xf32>, vector<8x32xf32> -> vector<8x64xf32>
    %cst_19 = arith.constant dense<0.000000e+00> : vector<8x32xf32>
    %27 = tpu.matmul %26, %3, %cst_19 {dimension_numbers = #tpu.dot_dimension_numbers<[1], [0], [0], [1], [0, 0, 1, 1], [], []>} : vector<8x64xf32>, vector<64x32xf32>, vector<8x32xf32> -> vector<8x32xf32>
    %28 = arith.addf %27, %6 : vector<8x32xf32>
    %29 = math.tanh %28 : vector<8x32xf32>
    %30 = arith.select %20, %29, %15 : vector<8x32xi1>, vector<8x32xf32>
    %cst_20 = arith.constant 0.000000e+00 : f32
    %31 = vector.broadcast %cst_20 : f32 to vector<8x32xf32>
    %32 = arith.select %20, %30, %31 : vector<8x32xi1>, vector<8x32xf32>
    %33 = arith.addf %16, %32 : vector<8x32xf32>
    %c1_i32 = arith.constant 1 : i32
    %34 = vector.broadcast %c1_i32 : i32 to vector<8x1xi32>
    %35 = arith.cmpi sgt, %1, %34 : vector<8x1xi32>
    %36 = vector.shape_cast %35 : vector<8x1xi1> to vector<8x1xi1>
    %37 = vector.broadcast %36 : vector<8x1xi1> to vector<8x32xi1>
    %38 = vector.extract_strided_slice %13 {offsets = [8, 0], sizes = [8, 32], strides = [1, 1]} : vector<64x32xf32> to vector<8x32xf32>
    %cst_21 = arith.constant dense<0.000000e+00> : vector<8x32xf32>
    %39 = tpu.matmul %25, %2, %cst_21 {dimension_numbers = #tpu.dot_dimension_numbers<[1], [0], [0], [1], [0, 0, 1, 1], [], []>} : vector<8x32xf32>, vector<32x32xf32>, vector<8x32xf32> -> vector<8x32xf32>
    %40 = arith.addf %38, %39 : vector<8x32xf32>
    %41 = math.tanh %40 : vector<8x32xf32>
    %42 = arith.select %37, %41, %25 : vector<8x32xi1>, vector<8x32xf32>
    %43 = tpu.concatenate %42, %30 in 1 : vector<8x32xf32>, vector<8x32xf32> -> vector<8x64xf32>
    %cst_22 = arith.constant dense<0.000000e+00> : vector<8x32xf32>
    %44 = tpu.matmul %43, %3, %cst_22 {dimension_numbers = #tpu.dot_dimension_numbers<[1], [0], [0], [1], [0, 0, 1, 1], [], []>} : vector<8x64xf32>, vector<64x32xf32>, vector<8x32xf32> -> vector<8x32xf32>
    %45 = arith.addf %44, %6 : vector<8x32xf32>
    %46 = math.tanh %45 : vector<8x32xf32>
    %47 = arith.select %37, %46, %30 : vector<8x32xi1>, vector<8x32xf32>
    %cst_23 = arith.constant 0.000000e+00 : f32
    %48 = vector.broadcast %cst_23 : f32 to vector<8x32xf32>
    %49 = arith.select %37, %47, %48 : vector<8x32xi1>, vector<8x32xf32>
    %50 = arith.addf %33, %49 : vector<8x32xf32>
    %c2_i32 = arith.constant 2 : i32
    %51 = vector.broadcast %c2_i32 : i32 to vector<8x1xi32>
    %52 = arith.cmpi sgt, %1, %51 : vector<8x1xi32>
    %53 = vector.shape_cast %52 : vector<8x1xi1> to vector<8x1xi1>
    %54 = vector.broadcast %53 : vector<8x1xi1> to vector<8x32xi1>
    %55 = vector.extract_strided_slice %13 {offsets = [16, 0], sizes = [8, 32], strides = [1, 1]} : vector<64x32xf32> to vector<8x32xf32>
    %cst_24 = arith.constant dense<0.000000e+00> : vector<8x32xf32>
    %56 = tpu.matmul %42, %2, %cst_24 {dimension_numbers = #tpu.dot_dimension_numbers<[1], [0], [0], [1], [0, 0, 1, 1], [], []>} : vector<8x32xf32>, vector<32x32xf32>, vector<8x32xf32> -> vector<8x32xf32>
    %57 = arith.addf %55, %56 : vector<8x32xf32>
    %58 = math.tanh %57 : vector<8x32xf32>
    %59 = arith.select %54, %58, %42 : vector<8x32xi1>, vector<8x32xf32>
    %60 = tpu.concatenate %59, %47 in 1 : vector<8x32xf32>, vector<8x32xf32> -> vector<8x64xf32>
    %cst_25 = arith.constant dense<0.000000e+00> : vector<8x32xf32>
    %61 = tpu.matmul %60, %3, %cst_25 {dimension_numbers = #tpu.dot_dimension_numbers<[1], [0], [0], [1], [0, 0, 1, 1], [], []>} : vector<8x64xf32>, vector<64x32xf32>, vector<8x32xf32> -> vector<8x32xf32>
    %62 = arith.addf %61, %6 : vector<8x32xf32>
    %63 = math.tanh %62 : vector<8x32xf32>
    %64 = arith.select %54, %63, %47 : vector<8x32xi1>, vector<8x32xf32>
    %cst_26 = arith.constant 0.000000e+00 : f32
    %65 = vector.broadcast %cst_26 : f32 to vector<8x32xf32>
    %66 = arith.select %54, %64, %65 : vector<8x32xi1>, vector<8x32xf32>
    %67 = arith.addf %50, %66 : vector<8x32xf32>
    %c3_i32 = arith.constant 3 : i32
    %68 = vector.broadcast %c3_i32 : i32 to vector<8x1xi32>
    %69 = arith.cmpi sgt, %1, %68 : vector<8x1xi32>
    %70 = vector.shape_cast %69 : vector<8x1xi1> to vector<8x1xi1>
    %71 = vector.broadcast %70 : vector<8x1xi1> to vector<8x32xi1>
    %72 = vector.extract_strided_slice %13 {offsets = [24, 0], sizes = [8, 32], strides = [1, 1]} : vector<64x32xf32> to vector<8x32xf32>
    %cst_27 = arith.constant dense<0.000000e+00> : vector<8x32xf32>
    %73 = tpu.matmul %59, %2, %cst_27 {dimension_numbers = #tpu.dot_dimension_numbers<[1], [0], [0], [1], [0, 0, 1, 1], [], []>} : vector<8x32xf32>, vector<32x32xf32>, vector<8x32xf32> -> vector<8x32xf32>
    %74 = arith.addf %72, %73 : vector<8x32xf32>
    %75 = math.tanh %74 : vector<8x32xf32>
    %76 = arith.select %71, %75, %59 : vector<8x32xi1>, vector<8x32xf32>
    %77 = tpu.concatenate %76, %64 in 1 : vector<8x32xf32>, vector<8x32xf32> -> vector<8x64xf32>
    %cst_28 = arith.constant dense<0.000000e+00> : vector<8x32xf32>
    %78 = tpu.matmul %77, %3, %cst_28 {dimension_numbers = #tpu.dot_dimension_numbers<[1], [0], [0], [1], [0, 0, 1, 1], [], []>} : vector<8x64xf32>, vector<64x32xf32>, vector<8x32xf32> -> vector<8x32xf32>
    %79 = arith.addf %78, %6 : vector<8x32xf32>
    %80 = math.tanh %79 : vector<8x32xf32>
    %81 = arith.select %71, %80, %64 : vector<8x32xi1>, vector<8x32xf32>
    %cst_29 = arith.constant 0.000000e+00 : f32
    %82 = vector.broadcast %cst_29 : f32 to vector<8x32xf32>
    %83 = arith.select %71, %81, %82 : vector<8x32xi1>, vector<8x32xf32>
    %84 = arith.addf %67, %83 : vector<8x32xf32>
    %c4_i32 = arith.constant 4 : i32
    %85 = vector.broadcast %c4_i32 : i32 to vector<8x1xi32>
    %86 = arith.cmpi sgt, %1, %85 : vector<8x1xi32>
    %87 = vector.shape_cast %86 : vector<8x1xi1> to vector<8x1xi1>
    %88 = vector.broadcast %87 : vector<8x1xi1> to vector<8x32xi1>
    %89 = vector.extract_strided_slice %13 {offsets = [32, 0], sizes = [8, 32], strides = [1, 1]} : vector<64x32xf32> to vector<8x32xf32>
    %cst_30 = arith.constant dense<0.000000e+00> : vector<8x32xf32>
    %90 = tpu.matmul %76, %2, %cst_30 {dimension_numbers = #tpu.dot_dimension_numbers<[1], [0], [0], [1], [0, 0, 1, 1], [], []>} : vector<8x32xf32>, vector<32x32xf32>, vector<8x32xf32> -> vector<8x32xf32>
    %91 = arith.addf %89, %90 : vector<8x32xf32>
    %92 = math.tanh %91 : vector<8x32xf32>
    %93 = arith.select %88, %92, %76 : vector<8x32xi1>, vector<8x32xf32>
    %94 = tpu.concatenate %93, %81 in 1 : vector<8x32xf32>, vector<8x32xf32> -> vector<8x64xf32>
    %cst_31 = arith.constant dense<0.000000e+00> : vector<8x32xf32>
    %95 = tpu.matmul %94, %3, %cst_31 {dimension_numbers = #tpu.dot_dimension_numbers<[1], [0], [0], [1], [0, 0, 1, 1], [], []>} : vector<8x64xf32>, vector<64x32xf32>, vector<8x32xf32> -> vector<8x32xf32>
    %96 = arith.addf %95, %6 : vector<8x32xf32>
    %97 = math.tanh %96 : vector<8x32xf32>
    %98 = arith.select %88, %97, %81 : vector<8x32xi1>, vector<8x32xf32>
    %cst_32 = arith.constant 0.000000e+00 : f32
    %99 = vector.broadcast %cst_32 : f32 to vector<8x32xf32>
    %100 = arith.select %88, %98, %99 : vector<8x32xi1>, vector<8x32xf32>
    %101 = arith.addf %84, %100 : vector<8x32xf32>
    %c5_i32 = arith.constant 5 : i32
    %102 = vector.broadcast %c5_i32 : i32 to vector<8x1xi32>
    %103 = arith.cmpi sgt, %1, %102 : vector<8x1xi32>
    %104 = vector.shape_cast %103 : vector<8x1xi1> to vector<8x1xi1>
    %105 = vector.broadcast %104 : vector<8x1xi1> to vector<8x32xi1>
    %106 = vector.extract_strided_slice %13 {offsets = [40, 0], sizes = [8, 32], strides = [1, 1]} : vector<64x32xf32> to vector<8x32xf32>
    %cst_33 = arith.constant dense<0.000000e+00> : vector<8x32xf32>
    %107 = tpu.matmul %93, %2, %cst_33 {dimension_numbers = #tpu.dot_dimension_numbers<[1], [0], [0], [1], [0, 0, 1, 1], [], []>} : vector<8x32xf32>, vector<32x32xf32>, vector<8x32xf32> -> vector<8x32xf32>
    %108 = arith.addf %106, %107 : vector<8x32xf32>
    %109 = math.tanh %108 : vector<8x32xf32>
    %110 = arith.select %105, %109, %93 : vector<8x32xi1>, vector<8x32xf32>
    %111 = tpu.concatenate %110, %98 in 1 : vector<8x32xf32>, vector<8x32xf32> -> vector<8x64xf32>
    %cst_34 = arith.constant dense<0.000000e+00> : vector<8x32xf32>
    %112 = tpu.matmul %111, %3, %cst_34 {dimension_numbers = #tpu.dot_dimension_numbers<[1], [0], [0], [1], [0, 0, 1, 1], [], []>} : vector<8x64xf32>, vector<64x32xf32>, vector<8x32xf32> -> vector<8x32xf32>
    %113 = arith.addf %112, %6 : vector<8x32xf32>
    %114 = math.tanh %113 : vector<8x32xf32>
    %115 = arith.select %105, %114, %98 : vector<8x32xi1>, vector<8x32xf32>
    %cst_35 = arith.constant 0.000000e+00 : f32
    %116 = vector.broadcast %cst_35 : f32 to vector<8x32xf32>
    %117 = arith.select %105, %115, %116 : vector<8x32xi1>, vector<8x32xf32>
    %118 = arith.addf %101, %117 : vector<8x32xf32>
    %c6_i32 = arith.constant 6 : i32
    %119 = vector.broadcast %c6_i32 : i32 to vector<8x1xi32>
    %120 = arith.cmpi sgt, %1, %119 : vector<8x1xi32>
    %121 = vector.shape_cast %120 : vector<8x1xi1> to vector<8x1xi1>
    %122 = vector.broadcast %121 : vector<8x1xi1> to vector<8x32xi1>
    %123 = vector.extract_strided_slice %13 {offsets = [48, 0], sizes = [8, 32], strides = [1, 1]} : vector<64x32xf32> to vector<8x32xf32>
    %cst_36 = arith.constant dense<0.000000e+00> : vector<8x32xf32>
    %124 = tpu.matmul %110, %2, %cst_36 {dimension_numbers = #tpu.dot_dimension_numbers<[1], [0], [0], [1], [0, 0, 1, 1], [], []>} : vector<8x32xf32>, vector<32x32xf32>, vector<8x32xf32> -> vector<8x32xf32>
    %125 = arith.addf %123, %124 : vector<8x32xf32>
    %126 = math.tanh %125 : vector<8x32xf32>
    %127 = arith.select %122, %126, %110 : vector<8x32xi1>, vector<8x32xf32>
    %128 = tpu.concatenate %127, %115 in 1 : vector<8x32xf32>, vector<8x32xf32> -> vector<8x64xf32>
    %cst_37 = arith.constant dense<0.000000e+00> : vector<8x32xf32>
    %129 = tpu.matmul %128, %3, %cst_37 {dimension_numbers = #tpu.dot_dimension_numbers<[1], [0], [0], [1], [0, 0, 1, 1], [], []>} : vector<8x64xf32>, vector<64x32xf32>, vector<8x32xf32> -> vector<8x32xf32>
    %130 = arith.addf %129, %6 : vector<8x32xf32>
    %131 = math.tanh %130 : vector<8x32xf32>
    %132 = arith.select %122, %131, %115 : vector<8x32xi1>, vector<8x32xf32>
    %cst_38 = arith.constant 0.000000e+00 : f32
    %133 = vector.broadcast %cst_38 : f32 to vector<8x32xf32>
    %134 = arith.select %122, %132, %133 : vector<8x32xi1>, vector<8x32xf32>
    %135 = arith.addf %118, %134 : vector<8x32xf32>
    %c7_i32 = arith.constant 7 : i32
    %136 = vector.broadcast %c7_i32 : i32 to vector<8x1xi32>
    %137 = arith.cmpi sgt, %1, %136 : vector<8x1xi32>
    %138 = vector.shape_cast %137 : vector<8x1xi1> to vector<8x1xi1>
    %139 = vector.broadcast %138 : vector<8x1xi1> to vector<8x32xi1>
    %140 = vector.extract_strided_slice %13 {offsets = [56, 0], sizes = [8, 32], strides = [1, 1]} : vector<64x32xf32> to vector<8x32xf32>
    %cst_39 = arith.constant dense<0.000000e+00> : vector<8x32xf32>
    %141 = tpu.matmul %127, %2, %cst_39 {dimension_numbers = #tpu.dot_dimension_numbers<[1], [0], [0], [1], [0, 0, 1, 1], [], []>} : vector<8x32xf32>, vector<32x32xf32>, vector<8x32xf32> -> vector<8x32xf32>
    %142 = arith.addf %140, %141 : vector<8x32xf32>
    %143 = math.tanh %142 : vector<8x32xf32>
    %144 = arith.select %139, %143, %127 : vector<8x32xi1>, vector<8x32xf32>
    %145 = tpu.concatenate %144, %132 in 1 : vector<8x32xf32>, vector<8x32xf32> -> vector<8x64xf32>
    %cst_40 = arith.constant dense<0.000000e+00> : vector<8x32xf32>
    %146 = tpu.matmul %145, %3, %cst_40 {dimension_numbers = #tpu.dot_dimension_numbers<[1], [0], [0], [1], [0, 0, 1, 1], [], []>} : vector<8x64xf32>, vector<64x32xf32>, vector<8x32xf32> -> vector<8x32xf32>
    %147 = arith.addf %146, %6 : vector<8x32xf32>
    %148 = math.tanh %147 : vector<8x32xf32>
    %149 = arith.select %139, %148, %132 : vector<8x32xi1>, vector<8x32xf32>
    %cst_41 = arith.constant 0.000000e+00 : f32
    %150 = vector.broadcast %cst_41 : f32 to vector<8x32xf32>
    %151 = arith.select %139, %149, %150 : vector<8x32xi1>, vector<8x32xf32>
    %152 = arith.addf %135, %151 : vector<8x32xf32>
    %c1_i32_42 = arith.constant 1 : i32
    %c8_i32 = arith.constant 8 : i32
    %153 = vector.broadcast %c1_i32_42 : i32 to vector<8x1xi32>
    %154 = arith.maxsi %153, %1 : vector<8x1xi32>
    %155 = vector.broadcast %c8_i32 : i32 to vector<8x1xi32>
    %156 = arith.minsi %155, %154 : vector<8x1xi32>
    %157 = arith.sitofp %156 : vector<8x1xi32> to vector<8x1xf32>
    %158 = vector.broadcast %157 : vector<8x1xf32> to vector<8x32xf32>
    %159 = arith.divf %152, %158 : vector<8x32xf32>
    %c0_43 = arith.constant 0 : index
    %c0_44 = arith.constant 0 : index
    %160 = vector.load %arg8[%c0_43, %c0_44] : memref<32x128xf32, #tpu.memory_space<vmem>>, vector<32x128xf32>
    %cst_45 = arith.constant dense<0.000000e+00> : vector<8x128xf32>
    %161 = tpu.matmul %159, %160, %cst_45 {dimension_numbers = #tpu.dot_dimension_numbers<[1], [0], [0], [1], [0, 0, 1, 1], [], []>} : vector<8x32xf32>, vector<32x128xf32>, vector<8x128xf32> -> vector<8x128xf32>
    %c0_46 = arith.constant 0 : index
    %c0_47 = arith.constant 0 : index
    %162 = vector.load %arg9[%c0_46, %c0_47] : memref<1x128xf32, #tpu.memory_space<vmem>>, vector<1x128xf32>
    %163 = vector.broadcast %162 : vector<1x128xf32> to vector<8x128xf32>
    %164 = arith.addf %161, %163 : vector<8x128xf32>
    %c0_48 = arith.constant 0 : index
    %c0_49 = arith.constant 0 : index
    %165 = vector.load %arg10[%c0_48, %c0_49] : memref<8x128xf32, #tpu.memory_space<vmem>>, vector<8x128xf32>
    tpu.vector_store %arg10[%c0_48, %c0_49], %164 {strides = array<i32>} : memref<8x128xf32, #tpu.memory_space<vmem>>, vector<8x128xf32>,
    return
  }
  func.func @transform_0(%arg0: i32) -> (i32, i32, i32) {
    %c0_i32 = arith.constant 0 : i32
    %c0_i32_0 = arith.constant 0 : i32
    %c0_i32_1 = arith.constant 0 : i32
    return %arg0, %c0_i32, %c0_i32_0 : i32, i32, i32
  }
  func.func @transform_1(%arg0: i32) -> (i32, i32, i32) {
    %c0_i32 = arith.constant 0 : i32
    %c0_i32_0 = arith.constant 0 : i32
    %c0_i32_1 = arith.constant 0 : i32
    return %arg0, %c0_i32, %c0_i32_0 : i32, i32, i32
  }
  func.func @transform_2(%arg0: i32) -> (i32, i32) {
    %c0_i32 = arith.constant 0 : i32
    %c0_i32_0 = arith.constant 0 : i32
    %c0_i32_1 = arith.constant 0 : i32
    return %c0_i32, %c0_i32_0 : i32, i32
  }
  func.func @transform_3(%arg0: i32) -> (i32, i32) {
    %c0_i32 = arith.constant 0 : i32
    %c0_i32_0 = arith.constant 0 : i32
    %c0_i32_1 = arith.constant 0 : i32
    return %c0_i32, %c0_i32_0 : i32, i32
  }
  func.func @transform_4(%arg0: i32) -> (i32, i32) {
    %c0_i32 = arith.constant 0 : i32
    %c0_i32_0 = arith.constant 0 : i32
    %c0_i32_1 = arith.constant 0 : i32
    return %c0_i32, %c0_i32_0 : i32, i32
  }
  func.func @transform_5(%arg0: i32) -> (i32, i32) {
    %c0_i32 = arith.constant 0 : i32
    %c0_i32_0 = arith.constant 0 : i32
    %c0_i32_1 = arith.constant 0 : i32
    return %c0_i32, %c0_i32_0 : i32, i32
  }
  func.func @transform_6(%arg0: i32) -> (i32, i32) {
    %c0_i32 = arith.constant 0 : i32
    %c0_i32_0 = arith.constant 0 : i32
    %c0_i32_1 = arith.constant 0 : i32
    return %c0_i32, %c0_i32_0 : i32, i32
  }
  func.func @transform_7(%arg0: i32) -> (i32, i32) {
    %c0_i32 = arith.constant 0 : i32
    %c0_i32_0 = arith.constant 0 : i32
    %c0_i32_1 = arith.constant 0 : i32
    return %c0_i32, %c0_i32_0 : i32, i32
  }
  func.func @transform_8(%arg0: i32) -> (i32, i32) {
    %c0_i32 = arith.constant 0 : i32
    %c0_i32_0 = arith.constant 0 : i32
    %c0_i32_1 = arith.constant 0 : i32
    return %c0_i32, %c0_i32_0 : i32, i32
  }
  func.func @transform_9(%arg0: i32) -> (i32, i32) {
    %c0_i32 = arith.constant 0 : i32
    %c0_i32_0 = arith.constant 0 : i32
    return %arg0, %c0_i32 : i32, i32
  }
}

</mosaic_0001>

<bundles_post_ra>
// kernel: tpu_custom_call.1
= control target key start
LH: loop header
LB: loop body
LE: loop exit
PB: predicated region body
PF: predicated region fallthrough
CT: control target
= control target key end

     0   :  { %vm64_vm0 = vcmask 130048   ;;  %v805_v6 = vmov 0   ;;  %s1196_s0 = inlined_call_operand.vmem [shape: s32[1,8,1], index: 0, kind: input, shape index: {}]   ;;  %s1197_s1 = inlined_call_operand.vmem [shape: f32[1,64,16], index: 1, kind: input, shape index: {}]   ;;  %s1198_s2 = inlined_call_operand.vmem [shape: f32[16,32], index: 2, kind: input, shape index: {}]   ;;  %s1199_s3 = inlined_call_operand.vmem [shape: f32[32,32], index: 3, kind: input, shape index: {}]   ;;  %s1200_s4 = inlined_call_operand.vmem [shape: f32[1,32], index: 4, kind: input, shape index: {}]   ;;  %s1201_s5 = inlined_call_operand.vmem [shape: f32[64,32], index: 5, kind: input, shape index: {}]   ;;  %s1202_s6 = inlined_call_operand.vmem [shape: f32[1,32], index: 6, kind: input, shape index: {}]   ;;  %s1203_s7 = inlined_call_operand.vmem [shape: f32[32,128], index: 7, kind: input, shape index: {}]   ;;  %s1204_s8 = inlined_call_operand.vmem [shape: f32[1,128], index: 8, kind: input, shape index: {}]   ;;  %s1205_s9 = inlined_call_operand.hbm [shape: f32[8,128], index: 9, kind: output, shape index: {}]  }
   0x1   :  { %v862_v0 = vld [vmem:[%s1199_s3 + $0x18] sm:$0xff]  ;;  %v59_v1 = vld [vmem:[%s1198_s2 + $0x8] sm:$0xff]  ;;  %v870_v2 = vld [vmem:[%s1199_s3 + $0x10] sm:$0xff]  ;;  %739 = vset.pattern.permute.xlu0 %v805_v6 }
   0x2   :  { %152 = vmatpush.msra.mxu1 %v862_v0  ;;  %103 = vmatpush.msra.mxu0 %v59_v1  ;;  %v58_v3 = vld [vmem:[%s1198_s2] sm:$0xff]  ;;  %v882_v5 = vld [vmem:[%s1199_s3 + $0x8] sm:$0xff]  ;;  %v893_v8 = vld [vmem:[%s1201_s5 + $0x38] sm:$0xff] }
   0x3   :  { %v50_v4 = vld [vmem:[%s1197_s1] sm:$0xff]  ;;  %212 = vmatpush.msra.mxu3 %v862_v0  ;;  %176 = vmatpush.msra.mxu2 %v893_v8 }
   0x4   :  { %v888_v7 = vld [vmem:[%s1196_s0] sm:$0xff]  ;;  %153 = vmatpush.msra.mxu1 %v870_v2  ;;  %104 = vmatpush.msra.mxu0 %v58_v3 }
   0x5   :  { %vm130_vm1 = vcmp.gt.s32.totalorder %v888_v7, 0  ;;  %711 = vmatmul.msk.f32.vlgmr.msra.gmra.mxu0 %vm64_vm0, %v50_v4  ;;  %v902_v9 = vld [vmem:[%s1199_s3] sm:$0xff] }
   0x6   :  { %v131_v10 = vsel %vm130_vm1, 1, %v805_v6  ;;  %154 = vmatpush.msra.mxu1 %v882_v5 }
   0x7   :  { %133 = vperm.xlu0 %739, %v131_v10  }
   0x8   :  { %14 = vsyncpa [#allocation3], 0  ;;  %213 = vmatpush.msra.mxu3 %v870_v2  ;;  %740 = vset.pattern.permute.xlu1 %v805_v6  ;;  %vm191_vm2 = vcmp.gt.s32.totalorder %v888_v7, 1  ;;  %v806_v11 = vmov 0.0   ;;  %v926_v13 = vld [vmem:[%s1201_s5 + $0x30] sm:$0xff]  ;;  %v934_v14 = vld [vmem:[%s1201_s5 + $0x28] sm:$0xff] }
   0x9   :  { %155 = vmatpush.msra.mxu1 %v902_v9  ;;  %741 = vset.pattern.permute.xlu2 %v805_v6  ;;  %v192_v12 = vsel %vm191_vm2, 1, %v805_v6  ;;  %v941_v15 = vld [vmem:[%s1201_s5 + $0x20] sm:$0xff]  ;;  %v949_v16 = vld [vmem:[%s1201_s5 + $0x18] sm:$0xff]  ;;  %v957_v17 = vld [vmem:[%s1201_s5 + $0x10] sm:$0xff]  ;;  %vm136_vm4 = vcmask 261120   ;;  %vm164_vm5 = vcmask 523264  }
   0xa   :  { %156 = vmatmul.f32.vlgmr.msra.gmra.mxu1 %v806_v11  ;;  %214 = vmatpush.msra.mxu3 %v882_v5  ;;  %v965_v18 = vld [vmem:[%s1201_s5 + $0x8] sm:$0xff]  ;;  %v973_v19 = vld [vmem:[%s1201_s5] sm:$0xff]  ;;  %v52_v30 = vld [vmem:[%s1197_s1 + $0x10] sm:$0xff]  ;;  %vm255_vm7 = vcmp.gt.s32.totalorder %v888_v7, 2  ;;  %vm383_vm8 = vcmp.gt.s32.totalorder %v888_v7, 4  ;;  %vm319_vm10 = vcmp.gt.s32.totalorder %v888_v7, 3 }
   0xb   :  { %239 = vmatpush.msrb.mxu1 %v893_v8  ;;  %623 = vmatpush.msrb.mxu0 %v893_v8  ;;  %v51_v20 = vld [vmem:[%s1197_s1 + $0x8] sm:$0xff]  ;;  %v1000_v21 = vld [vmem:[%s1200_s4] ss:$0 sm:$0xff]  ;;  %v256_v43 = vsel %vm255_vm7, 1, %v805_v6  ;;  %v53_v44 = vld [vmem:[%s1197_s1 + $0x18] sm:$0xff]  ;;  %v384_v45 = vsel %vm383_vm8, 1, %v805_v6 }
   0xc   :  { %215 = vmatpush.msra.mxu3 %v902_v9  ;;  %177 = vmatpush.msra.mxu2 %v926_v13  ;;  %v1029_v33 = vld [vmem:[%s1202_s6] ss:$0 sm:$0xff]  ;;  %s807_s6 = smov 32   ;;  %v320_v59 = vsel %vm319_vm10, 1, %v805_v6  ;;  %vm447_vm12 = vcmp.gt.s32.totalorder %v888_v7, 5  ;;  %vm511_vm15 = vcmp.gt.s32.totalorder %v888_v7, 6 }
   0xd   :  { %240 = vmatpush.msrb.mxu1 %v926_v13  ;;  %624 = vmatpush.msrb.mxu0 %v926_v13  ;;  %v54_v60 = vld [vmem:[%s1197_s1 + $0x20] sm:$0xff]  ;;  %s808_s17 = smov [#allocation2]   ;;  %s702_s4 = sshll.u32 %s1205_s9, 4  ;;  %s703_s4 = int_to_ptr.hbm [resolvable:$true] %s702_s4 }
   0xe   :  { %276 = vmatpush.msrb.mxu3 %v862_v0  ;;  %178 = vmatpush.msra.mxu2 %v934_v14  ;;  %s700_s18 = sshll.u32 %s808_s17, 4  ;;  %s701_s18 = int_to_ptr.vmem [resolvable:$true] %s700_s18 }
   0xf   :  { %194 = vperm.xlu0 %739, %v192_v12   ;;  %241 = vmatpush.msrb.mxu1 %v934_v14 }
  0x10   :  { %277 = vmatpush.msrb.mxu3 %v870_v2  ;;  %625 = vmatpush.msrb.mxu0 %v934_v14 }
  0x11   :  { %179 = vmatpush.msra.mxu2 %v941_v15  ;;  %242 = vmatpush.msrb.mxu1 %v941_v15 }
  0x12   :  { %278 = vmatpush.msrb.mxu3 %v882_v5  ;;  %626 = vmatpush.msrb.mxu0 %v941_v15 }
  0x13   :  { %180 = vmatpush.msra.mxu2 %v949_v16  ;;  %243 = vmatpush.msrb.mxu1 %v949_v16 }
  0x14   :  { %279 = vmatpush.msrb.mxu3 %v902_v9  ;;  %627 = vmatpush.msrb.mxu0 %v949_v16 }
  0x15   :  { %181 = vmatpush.msra.mxu2 %v957_v17  ;;  %244 = vmatpush.msrb.mxu1 %v957_v17 }
  0x16   :  { %628 = vmatpush.msrb.mxu0 %v957_v17 }
  0x17   :  { %182 = vmatpush.msra.mxu2 %v965_v18  ;;  %245 = vmatpush.msrb.mxu1 %v965_v18 }
  0x18   :  { %629 = vmatpush.msrb.mxu0 %v965_v18 }
  0x19   :  { %183 = vmatpush.msra.mxu2 %v973_v19  ;;  %246 = vmatpush.msrb.mxu1 %v973_v19 }
  0x1a   :  { %712 = vmatmul.msk.f32.gmra.mxu0 %vm64_vm0, %v51_v20 }
  0x1b   :  { %303 = vmatpush.msrb.mxu2 %v893_v8  ;;  %367 = vmatpush.msra.mxu1 %v893_v8 }
  0x1c   :  { %630 = vmatpush.msrb.mxu0 %v973_v19 }
  0x1d   :  { %304 = vmatpush.msrb.mxu2 %v926_v13  ;;  %368 = vmatpush.msra.mxu1 %v926_v13 }
  0x1f   :  { %305 = vmatpush.msrb.mxu2 %v934_v14  ;;  %369 = vmatpush.msra.mxu1 %v934_v14 }
  0x21   :  { %306 = vmatpush.msrb.mxu2 %v941_v15  ;;  %370 = vmatpush.msra.mxu1 %v941_v15 }
  0x22   :  { %713 = vmatmul.msk.f32.gmra.mxu0 %vm64_vm0, %v52_v30 }
  0x23   :  { %307 = vmatpush.msrb.mxu2 %v949_v16  ;;  %371 = vmatpush.msra.mxu1 %v949_v16 }
  0x25   :  { %308 = vmatpush.msrb.mxu2 %v957_v17  ;;  %372 = vmatpush.msra.mxu1 %v957_v17 }
  0x27   :  { %309 = vmatpush.msrb.mxu2 %v965_v18  ;;  %373 = vmatpush.msra.mxu1 %v965_v18 }
  0x29   :  { %310 = vmatpush.msrb.mxu2 %v973_v19  ;;  %374 = vmatpush.msra.mxu1 %v973_v19 }
  0x2a   :  { %714 = vmatmul.msk.f32.gmra.mxu0 %vm64_vm0, %v53_v44  ;;  %v57_v44 = vld [vmem:[%s1197_s1 + $0x38] sm:$0xff] }
  0x32   :  { %715 = vmatmul.msk.f32.gmra.mxu0 %vm64_vm0, %v54_v60 }
  0x79   :  { %v134_v26 = vpop.permute.xlu0 %133 }
  0x7a   :  { %vm135_vm3 = vcmp.eq.s32.totalorder %v134_v26, 1 }
  0x81   :  { %v1032_v38 = vpop.permute.xlu0 %194 }
  0x82   :  { %v106_v22 = vpop.f32.mrf.mxu0  ;;  %vm196_vm6 = vcmp.eq.s32.totalorder %v1032_v38, 1 }
  0x83   :  { %v107_v23 = vadd.f32 %v1000_v21, %v106_v22 }
  0x87   :  { %v157_v24 = vpop.f32.mrf.mxu1 }
  0x88   :  { %v160_v25 = vadd.f32 %v157_v24, %v107_v23 }
  0x8a   :  { %745 = vtanh.f32 %v160_v25 }
  0x90   :  { %v746_v27 = vpop.eup %745 }
  0x91   :  { %v162_v28 = vsel %vm135_vm3, %v746_v27, 0.0  ;;  %v448_v27 = vsel %vm447_vm12, 1, %v805_v6 }
  0x92   :  { %720 = vmatmul.msk.f32.vlgmr.msra.gmra.mxu3 %vm136_vm4, %v162_v28  ;;  %v163_v29 = vsel %vm136_vm4, %v162_v28, 0.0 }
  0x93   :  { %719 = vmatmul.msk.f32.vlgmr.msra.gmra.mxu2 %vm164_vm5, %v163_v29  ;;  %340 = vmatpush.msra.mxu3 %v862_v0 }
  0x94   :  { %431 = vmatpush.msra.mxu2 %v893_v8 }
  0x95   :  { %341 = vmatpush.msra.mxu3 %v870_v2 }
  0x96   :  { %432 = vmatpush.msra.mxu2 %v926_v13 }
  0x97   :  { %342 = vmatpush.msra.mxu3 %v882_v5  ;;  %v109_v31 = vpop.f32.mrf.mxu0 }
  0x98   :  { %433 = vmatpush.msra.mxu2 %v934_v14  ;;  %v110_v32 = vadd.f32 %v1000_v21, %v109_v31 }
  0x99   :  { %343 = vmatpush.msra.mxu3 %v902_v9 }
  0x9a   :  { %434 = vmatpush.msra.mxu2 %v941_v15 }
  0x9c   :  { %435 = vmatpush.msra.mxu2 %v949_v16 }
  0x9e   :  { %436 = vmatpush.msra.mxu2 %v957_v17 }
  0x9f   :  { %v112_v48 = vpop.f32.mrf.mxu0 }
  0xa0   :  { %437 = vmatpush.msra.mxu2 %v965_v18  ;;  %v113_v49 = vadd.f32 %v1000_v21, %v112_v48 }
  0xa2   :  { %438 = vmatpush.msra.mxu2 %v973_v19 }
  0xa7   :  { %v115_v61 = vpop.f32.mrf.mxu0 }
  0xa8   :  { %v116_v62 = vadd.f32 %v1000_v21, %v115_v61 }
 0x115   :  { %v217_v34 = vpop.f32.mrf.mxu3 }
 0x116   :  { %v220_v35 = vadd.f32 %v217_v34, %v110_v32  ;;  %v185_v36 = vpop.f32.mrf.mxu2  ;;  %v56_v32 = vld [vmem:[%s1197_s1 + $0x30] sm:$0xff] }
 0x117   :  { %v186_v37 = vadd.f32 %v1029_v33, %v185_v36 }
 0x118   :  { %747 = vtanh.f32 %v220_v35 }
 0x119   :  { %749 = vtanh.f32 %v186_v37 }
 0x11e   :  { %v748_v39 = vpop.eup %747 }
 0x11f   :  { %v750_v40 = vpop.eup %749  ;;  %v222_v41 = vsel %vm196_vm6, %v748_v39, %v162_v28 }
 0x120   :  { %722 = vmatmul.msk.f32.vlgmr.msrb.gmra.mxu3 %vm136_vm4, %v222_v41  ;;  %v1039_v42 = vsel %vm135_vm3, %v750_v40, 0.0 }
 0x121   :  { %224 = vrot.lane.b32.xlu1 %v1039_v42, %s807_s6  ;;  %404 = vmatpush.msrb.mxu3 %v862_v0 }
 0x123   :  { %405 = vmatpush.msrb.mxu3 %v870_v2 }
 0x125   :  { %406 = vmatpush.msrb.mxu3 %v882_v5 }
 0x127   :  { %407 = vmatpush.msrb.mxu3 %v902_v9 }
 0x129   :  { %258 = vperm.xlu1 %740, %v256_v43   ;;  %v512_v43 = vsel %vm511_vm15, 1, %v805_v6 }
 0x131   :  { %386 = vperm.xlu1 %740, %v384_v45  }
 0x193   :  { %v225_v46 = vpop.permute.xlu1 %224 }
 0x194   :  { %v227_v47 = vsel %vm136_vm4, %v222_v41, %v225_v46 }
 0x195   :  { %721 = vmatmul.msk.f32.vlgmr.msrb.gmra.mxu1 %vm164_vm5, %v227_v47 }
 0x196   :  { %495 = vmatpush.msrb.mxu1 %v893_v8 }
 0x198   :  { %496 = vmatpush.msrb.mxu1 %v926_v13 }
 0x19a   :  { %497 = vmatpush.msrb.mxu1 %v934_v14 }
 0x19b   :  { %v259_v52 = vpop.permute.xlu1 %258 }
 0x19c   :  { %498 = vmatpush.msrb.mxu1 %v941_v15  ;;  %vm260_vm9 = vcmp.eq.s32.totalorder %v259_v52, 1 }
 0x19e   :  { %499 = vmatpush.msrb.mxu1 %v949_v16 }
 0x1a0   :  { %500 = vmatpush.msrb.mxu1 %v957_v17 }
 0x1a2   :  { %501 = vmatpush.msrb.mxu1 %v965_v18 }
 0x1a3   :  { %v281_v50 = vpop.f32.mrf.mxu3  ;;  %v387_v26 = vpop.permute.xlu1 %386 }
 0x1a4   :  { %v284_v51 = vadd.f32 %v281_v50, %v113_v49  ;;  %502 = vmatpush.msrb.mxu1 %v973_v19  ;;  %vm388_vm13 = vcmp.eq.s32.totalorder %v387_v26, 1 }
 0x1a6   :  { %751 = vtanh.f32 %v284_v51 }
 0x1ac   :  { %v752_v53 = vpop.eup %751 }
 0x1ad   :  { %v286_v54 = vsel %vm260_vm9, %v752_v53, %v222_v41 }
 0x1ae   :  { %724 = vmatmul.msk.f32.vlgmr.msra.gmra.mxu3 %vm136_vm4, %v286_v54 }
 0x1af   :  { %468 = vmatpush.msra.mxu3 %v862_v0 }
 0x1b1   :  { %469 = vmatpush.msra.mxu3 %v870_v2 }
 0x1b3   :  { %470 = vmatpush.msra.mxu3 %v882_v5 }
 0x1b5   :  { %471 = vmatpush.msra.mxu3 %v902_v9 }
 0x212   :  { %v248_v55 = vpop.f32.mrf.mxu1 }
 0x213   :  { %v249_v56 = vadd.f32 %v1029_v33, %v248_v55 }
 0x215   :  { %753 = vtanh.f32 %v249_v56 }
 0x21b   :  { %v754_v57 = vpop.eup %753 }
 0x21c   :  { %v252_v58 = vsel %vm196_vm6, %v754_v57, %v1039_v42 }
 0x21d   :  { %288 = vrot.lane.b32.xlu2 %v252_v58, %s807_s6 }
 0x225   :  { %322 = vperm.xlu2 %741, %v320_v59  }
 0x231   :  { %v345_v63 = vpop.f32.mrf.mxu3 }
 0x232   :  { %v348_v1 = vadd.f32 %v345_v63, %v116_v62 }
 0x234   :  { %755 = vtanh.f32 %v348_v1 }
 0x23a   :  { %v756_v11 = vpop.eup %755 }
 0x277   :  { %v289_v3 = vpop.permute.xlu2 %288 }
 0x278   :  { %v291_v4 = vsel %vm136_vm4, %v286_v54, %v289_v3  ;;  %v639_v3 = vsel %vm191_vm2, %v888_v7, 1 }
 0x279   :  { %723 = vmatmul.msk.f32.vlgmr.msrb.gmra.mxu2 %vm164_vm5, %v291_v4  ;;  %vm640_vm3 = vcmp.lt.s32.totalorder %v639_v3, 8 }
 0x27a   :  { %559 = vmatpush.msrb.mxu2 %v893_v8  ;;  %v55_v8 = vld [vmem:[%s1197_s1 + $0x28] sm:$0xff] }
 0x27b   :  { %716 = vmatmul.msk.f32.gmra.mxu0 %vm64_vm0, %v55_v8 }
 0x27c   :  { %560 = vmatpush.msrb.mxu2 %v926_v13 }
 0x27e   :  { %561 = vmatpush.msrb.mxu2 %v934_v14 }
 0x27f   :  { %v1089_v10 = vpop.permute.xlu2 %322 }
 0x280   :  { %vm324_vm11 = vcmp.eq.s32.totalorder %v1089_v10, 1  ;;  %562 = vmatpush.msrb.mxu2 %v941_v15  ;;  %v118_v15 = vpop.f32.mrf.mxu0 }
 0x281   :  { %v350_v12 = vsel %vm324_vm11, %v756_v11, %v286_v54 }
 0x282   :  { %726 = vmatmul.msk.f32.vlgmr.msrb.gmra.mxu3 %vm136_vm4, %v350_v12  ;;  %563 = vmatpush.msrb.mxu2 %v949_v16  ;;  %v253_v16 = vsel %vm196_vm6, %v754_v57, 0.0 }
 0x283   :  { %532 = vmatpush.msrb.mxu3 %v862_v0  ;;  %717 = vmatmul.msk.f32.gmra.mxu0 %vm64_vm0, %v56_v32 }
 0x284   :  { %564 = vmatpush.msrb.mxu2 %v957_v17  ;;  %v119_v17 = vadd.f32 %v1000_v21, %v118_v15 }
 0x285   :  { %533 = vmatpush.msrb.mxu3 %v870_v2 }
 0x286   :  { %565 = vmatpush.msrb.mxu2 %v965_v18 }
 0x287   :  { %534 = vmatpush.msrb.mxu3 %v882_v5 }
 0x288   :  { %566 = vmatpush.msrb.mxu2 %v973_v19  ;;  %v254_v19 = vadd.f32 %v253_v16, %v1039_v42 }
 0x289   :  { %535 = vmatpush.msrb.mxu3 %v902_v9 }
 0x28b   :  { %718 = vmatmul.msk.f32.gmra.mxu0 %vm64_vm0, %v57_v44  ;;  %vm575_vm0 = vcmp.gt.s32.totalorder %v888_v7, 7 }
 0x28c   :  { %v576_v60 = vsel %vm575_vm0, 1, %v805_v6 }
 0x2f8   :  { %v121_v34 = vpop.f32.mrf.mxu0 }
 0x2fc   :  { %v312_v13 = vpop.f32.mrf.mxu2 }
 0x2fd   :  { %v313_v14 = vadd.f32 %v1029_v33, %v312_v13 }
 0x2ff   :  { %757 = vtanh.f32 %v313_v14 }
 0x300   :  { %v124_v45 = vpop.f32.mrf.mxu0 }
 0x301   :  { %v125_v46 = vadd.f32 %v1000_v21, %v124_v45 }
 0x305   :  { %v758_v18 = vpop.eup %757  ;;  %v409_v20 = vpop.f32.mrf.mxu3 }
 0x306   :  { %v317_v22 = vsel %vm260_vm9, %v758_v18, 0.0  ;;  %v412_v23 = vadd.f32 %v409_v20, %v119_v17  ;;  %v316_v24 = vsel %vm260_vm9, %v758_v18, %v252_v58 }
 0x307   :  { %v318_v25 = vadd.f32 %v317_v22, %v254_v19  ;;  %352 = vrot.lane.b32.xlu0 %v316_v24, %s807_s6 }
 0x308   :  { %759 = vtanh.f32 %v412_v23  ;;  %v127_v20 = vpop.f32.mrf.mxu0 }
 0x309   :  { %v128_v22 = vadd.f32 %v1000_v21, %v127_v20 }
 0x30e   :  { %v760_v28 = vpop.eup %759 }
 0x30f   :  { %450 = vperm.xlu0 %739, %v448_v27   ;;  %v414_v29 = vsel %vm388_vm13, %v760_v28, %v350_v12 }
 0x310   :  { %728 = vmatmul.msk.f32.vlgmr.msra.gmra.mxu3 %vm136_vm4, %v414_v29 }
 0x311   :  { %596 = vmatpush.msra.mxu3 %v862_v0  ;;  %v122_v0 = vadd.f32 %v1000_v21, %v121_v34  ;;  %v665_v21 = vld [vmem:[%s1203_s7 + $0x10] sm:$0xff]  ;;  %v663_v34 = vld [vmem:[%s1203_s7] sm:$0xff] }
 0x313   :  { %597 = vmatpush.msra.mxu3 %v870_v2 }
 0x315   :  { %598 = vmatpush.msra.mxu3 %v882_v5 }
 0x317   :  { %599 = vmatpush.msra.mxu3 %v902_v9 }
 0x379   :  { %v353_v30 = vpop.permute.xlu0 %352 }
 0x37a   :  { %v355_v31 = vsel %vm136_vm4, %v350_v12, %v353_v30  ;;  %v641_v12 = vsel %vm640_vm3, %v639_v3, 8  ;;  %v666_v30 = vld [vmem:[%s1203_s7 + $0x18] sm:$0xff] }
 0x37b   :  { %725 = vmatmul.msk.f32.vlgmr.msra.gmra.mxu1 %vm164_vm5, %v355_v31  ;;  %v642_v8 = vcvt.s32.f32 %v641_v12  ;;  %v664_v31 = vld [vmem:[%s1203_s7 + $0x8] sm:$0xff] }
 0x37c   :  { %686 = vmatpush.msra.mxu1 %v666_v30 }
 0x37e   :  { %687 = vmatpush.msra.mxu1 %v665_v21 }
 0x380   :  { %688 = vmatpush.msra.mxu1 %v664_v31 }
 0x381   :  { %v451_v5 = vpop.permute.xlu0 %450 }
 0x382   :  { %vm452_vm14 = vcmp.eq.s32.totalorder %v451_v5, 1  ;;  %689 = vmatpush.msra.mxu1 %v663_v34 }
 0x393   :  { %v473_v35 = vpop.f32.mrf.mxu3 }
 0x394   :  { %v476_v2 = vadd.f32 %v473_v35, %v122_v0 }
 0x396   :  { %761 = vtanh.f32 %v476_v2 }
 0x39c   :  { %v762_v36 = vpop.eup %761 }
 0x39d   :  { %v478_v9 = vsel %vm452_vm14, %v762_v36, %v414_v29 }
 0x39e   :  { %730 = vmatmul.msk.f32.vlgmr.msrb.gmra.mxu3 %vm136_vm4, %v478_v9 }
 0x3f8   :  { %v376_v37 = vpop.f32.mrf.mxu1 }
 0x3f9   :  { %v377_v38 = vadd.f32 %v1029_v33, %v376_v37 }
 0x3fb   :  { %763 = vtanh.f32 %v377_v38 }
 0x401   :  { %v764_v39 = vpop.eup %763 }
 0x402   :  { %v381_v40 = vsel %vm324_vm11, %v764_v39, 0.0  ;;  %v380_v41 = vsel %vm324_vm11, %v764_v39, %v316_v24 }
 0x403   :  { %v382_v42 = vadd.f32 %v381_v40, %v318_v25  ;;  %416 = vrot.lane.b32.xlu2 %v380_v41, %s807_s6 }
 0x40b   :  { %514 = vperm.xlu2 %741, %v512_v43  }
 0x421   :  { %v537_v47 = vpop.f32.mrf.mxu3 }
 0x422   :  { %v540_v48 = vadd.f32 %v537_v47, %v125_v46 }
 0x424   :  { %765 = vtanh.f32 %v540_v48 }
 0x42a   :  { %v766_v52 = vpop.eup %765 }
 0x45d   :  { %v417_v49 = vpop.permute.xlu2 %416 }
 0x45e   :  { %v419_v50 = vsel %vm136_vm4, %v414_v29, %v417_v49 }
 0x45f   :  { %727 = vmatmul.msk.f32.vlgmr.msra.gmra.mxu2 %vm164_vm5, %v419_v50 }
 0x465   :  { %v515_v51 = vpop.permute.xlu2 %514 }
 0x466   :  { %vm516_vm1 = vcmp.eq.s32.totalorder %v515_v51, 1 }
 0x467   :  { %v542_v53 = vsel %vm516_vm1, %v766_v52, %v478_v9 }
 0x468   :  { %732 = vmatmul.msk.f32.vlgmr.msra.gmra.mxu3 %vm136_vm4, %v542_v53 }
 0x4e2   :  { %v440_v54 = vpop.f32.mrf.mxu2 }
 0x4e3   :  { %v441_v55 = vadd.f32 %v1029_v33, %v440_v54 }
 0x4e5   :  { %767 = vtanh.f32 %v441_v55 }
 0x4eb   :  { %v768_v56 = vpop.eup %767  ;;  %v601_v23 = vpop.f32.mrf.mxu3 }
 0x4ec   :  { %v445_v57 = vsel %vm388_vm13, %v768_v56, 0.0  ;;  %v444_v58 = vsel %vm388_vm13, %v768_v56, %v380_v41  ;;  %v604_v24 = vadd.f32 %v601_v23, %v128_v22 }
 0x4ed   :  { %v446_v59 = vadd.f32 %v445_v57, %v382_v42  ;;  %480 = vrot.lane.b32.xlu1 %v444_v58, %s807_s6 }
 0x4f5   :  { %578 = vperm.xlu1 %740, %v576_v60  }
 0x55f   :  { %v481_v61 = vpop.permute.xlu1 %480 }
 0x560   :  { %v483_v62 = vsel %vm136_vm4, %v478_v9, %v481_v61 }
 0x561   :  { %729 = vmatmul.msk.f32.vlgmr.msrb.gmra.mxu1 %vm164_vm5, %v483_v62 }
 0x567   :  { %v579_v25 = vpop.permute.xlu1 %578 }
 0x568   :  { %vm580_vm2 = vcmp.eq.s32.totalorder %v579_v25, 1 }
 0x5de   :  { %v504_v63 = vpop.f32.mrf.mxu1 }
 0x5df   :  { %v505_v1 = vadd.f32 %v1029_v33, %v504_v63 }
 0x5e1   :  { %769 = vtanh.f32 %v505_v1 }
 0x5e7   :  { %v770_v4 = vpop.eup %769 }
 0x5e8   :  { %v509_v10 = vsel %vm452_vm14, %v770_v4, 0.0  ;;  %v508_v6 = vsel %vm452_vm14, %v770_v4, %v444_v58 }
 0x5e9   :  { %v510_v11 = vadd.f32 %v509_v10, %v446_v59  ;;  %544 = vrot.lane.b32.xlu0 %v508_v6, %s807_s6 }
 0x5f1   :  { %645 = vperm.xlu0 %739, %v642_v8  }
 0x65b   :  { %v545_v13 = vpop.permute.xlu0 %544 }
 0x65c   :  { %v547_v14 = vsel %vm136_vm4, %v542_v53, %v545_v13 }
 0x65d   :  { %731 = vmatmul.msk.f32.vlgmr.msrb.gmra.mxu2 %vm164_vm5, %v547_v14 }
 0x663   :  { %v646_v32 = vpop.permute.xlu0 %645 }
 0x664   :  { %v659_v38 = vand.u32 2147483648, %v646_v32  ;;  %vm653_vm6 = vweird.f32 %v646_v32  ;;  %v657_v39 = vand.u32 2147483647, %v646_v32 }
 0x666   :  { %v660_v42 = vor.u32 1.1754944e-38, %v659_v38  ;;  %vm658_vm8 = vcmp.eq.f32.partialorder %v657_v39, 8.507059e+37 }
 0x6e0   :  { %v568_v15 = vpop.f32.mrf.mxu2 }
 0x6e1   :  { %v569_v7 = vadd.f32 %v1029_v33, %v568_v15 }
 0x6e3   :  { %771 = vtanh.f32 %v569_v7 }
 0x6e4   :  { %773 = vtanh.f32 %v604_v24 }
 0x6e5   :  { %775 = vrcp.f32 %v646_v32 }
 0x6e9   :  { %v772_v16 = vpop.eup %771 }
 0x6ea   :  { %v573_v17 = vsel %vm516_vm1, %v772_v16, 0.0  ;;  %v572_v18 = vsel %vm516_vm1, %v772_v16, %v508_v6  ;;  %v774_v26 = vpop.eup %773 }
 0x6eb   :  { %v574_v19 = vadd.f32 %v573_v17, %v510_v11  ;;  %608 = vrot.lane.b32.xlu2 %v572_v18, %s807_s6  ;;  %v606_v27 = vsel %vm580_vm2, %v774_v26, %v542_v53  ;;  %v776_v0 = vpop.eup %775 }
 0x6ec   :  { %v649_v35 = vmul.f32 %v776_v0, %v646_v32 }
 0x6ee   :  { %v650_v2 = vsub.f32 1.0, %v649_v35 }
 0x6f0   :  { %v651_v36 = vmul.f32 %v776_v0, %v650_v2 }
 0x6f2   :  { %v652_v37 = vadd.f32 %v776_v0, %v651_v36 }
 0x745   :  { %v609_v28 = vpop.permute.xlu2 %608 }
 0x746   :  { %v611_v29 = vsel %vm136_vm4, %v606_v27, %v609_v28 }
 0x747   :  { %733 = vmatmul.msk.f32.vlgmr.msrb.gmra.mxu0 %vm164_vm5, %v611_v29  ;;  %vm654_vm5 = vweird.f32 %v776_v0 }
 0x748   :  { %vm655_vm7 = vmor %vm653_vm6, %vm654_vm5 }
 0x749   :  { %v656_v41 = vsel %vm655_vm7, %v776_v0, %v652_v37 }
 0x74a   :  { %v661_v45 = vsel %vm658_vm8, %v660_v42, %v656_v41 }
 0x7c4   :  { %v632_v5 = vpop.f32.mrf.mxu0 }
 0x7c5   :  { %v633_v9 = vadd.f32 %v1029_v33, %v632_v5  ;;  %v744_v33 = vld [vmem:[%s1204_s8] ss:$0 sm:$0xff] }
 0x7c7   :  { %777 = vtanh.f32 %v633_v9 }
 0x7cd   :  { %v778_v40 = vpop.eup %777 }
 0x7ce   :  { %v636_v43 = vsel %vm580_vm2, %v778_v40, 0.0 }
 0x7cf   :  { %v637_v44 = vadd.f32 %v636_v43, %v574_v19 }
 0x7d1   :  { %v662_v46 = vmul.f32 %v661_v45, %v637_v44 }
 0x7d3   :  { %734 = vmatmul.msk.f32.vlgmr.msra.gmra.mxu1 %vm136_vm4, %v662_v46 }
 0x850   :  { %v691_v47 = vpop.f32.mrf.mxu1 }
 0x851   :  { %v692_v48 = vadd.f32 %v744_v33, %v691_v47 }
 0x853   :  { %694 = vst [vmem:[#allocation2] sm:$0xff] %v692_v48 }
 0x854   :  { %705 = dma.vmem_to_hbm [thread:$0]  %s701_s18, 128, %s703_s4, [#allocation3]  }
 0x855   :  { %803 = dma.done.wait [#allocation3], 128  }
 0x856   :  { %804 = vsyncadd [#allocation3], 4294967168 }
 0x857   :  { %710 = vsyncpa [#allocation3], 1 }

</bundles_post_ra>
